<compile_context>
chip_gen: v5e
topology: v5e:2x2
jax: 0.10.0
libtpu: 0.0.40
codegen_flags: <defaults>
</compile_context>

<pallas_src>
import functools

import jax
import jax.numpy as jnp
from jax.experimental import pallas as pl
from jax.experimental.pallas import tpu as pltpu


def _sigmoid_via_tanh(z):
    # sigmoid(z) == 0.5 * (1 + tanh(z/2)) -- exact identity, single EUP op.
    # (A VPU rational approximation only pays off if a bundle dump shows the
    #  EUP slot saturating -- typically v5e only; not done here.)
    return 0.5 * (jnp.tanh(0.5 * z) + 1.0)


def _convlstm_kernel(x_ref, h_ref, c_ref, wih_ref, whh_ref, b_ref,
                     hout_ref, cout_ref, *, hidden_size, compute_dtype):
    # Cast activations to the compute dtype *inside* the kernel (VPU cast,
    # hidden under the DMA) -- the HBM stream stays in the caller's dtype so
    # there is no separate wrapper-side cast pass over x / h.
    xc = x_ref[...].astype(compute_dtype)
    hc = h_ref[...].astype(compute_dtype)

    # Channel-major: gates has shape (4*Ch, t_hw); lane axis is spatial (dense).
    gates = (
        jnp.dot(wih_ref[...], xc, preferred_element_type=jnp.float32)
        + jnp.dot(whh_ref[...], hc, preferred_element_type=jnp.float32)
        + b_ref[...]  # (4*Ch, 1) broadcasts along the lane (spatial) axis
    )
    Hc = hidden_size
    i = _sigmoid_via_tanh(gates[0 * Hc:1 * Hc, :])
    f = _sigmoid_via_tanh(gates[1 * Hc:2 * Hc, :])
    g = jnp.tanh(gates[2 * Hc:3 * Hc, :])
    o = _sigmoid_via_tanh(gates[3 * Hc:4 * Hc, :])

    c_new = f * c_ref[...].astype(jnp.float32) + i * g
    h_new = o * jnp.tanh(c_new)

    hout_ref[...] = h_new.astype(hout_ref.dtype)
    cout_ref[...] = c_new.astype(cout_ref.dtype)


def _vmem_capacity_bytes(default=128 * 2**20):
    """Per-core VMEM capacity; falls back to 128 MiB if the query fails."""
    try:
        info = pltpu.get_tpu_info()
        cap = getattr(info, "vmem_capacity_bytes", None)
        if cap:
            return int(cap)
    except Exception:
        pass
    return default


def _pick_tile(hw_pad, batch, per_thw_bytes, fixed_bytes, budget,
               t_hw_max, min_grid_steps):
    """Largest lane-dense tile that fits the VMEM budget, preferring tiles
    that still leave >= min_grid_steps grid steps (megacore + pipelining)."""
    cands = [d for d in range(128, hw_pad + 1, 128) if hw_pad % d == 0]
    if t_hw_max is not None:
        capped = [d for d in cands if d <= t_hw_max]
        cands = capped if capped else [min(cands)]
    fitting = [d for d in cands if fixed_bytes + per_thw_bytes(d) <= budget]
    if not fitting:
        fitting = [min(cands)]
    good = [d for d in fitting if batch * (hw_pad // d) >= min_grid_steps]
    return max(good) if good else max(fitting)


def conv_lstm_cell_pallas(x_nchw, h_nchw, c_nchw, w_ih, w_hh, b_ih, b_hh, *,
                          compute_dtype=jnp.bfloat16, h_out_dtype=None,
                          t_hw_max=None, min_grid_steps=8, alias_state=False):
    """ConvLSTMCell forward (1x1 kernel).

    x_nchw: (B, Cin, H, W)   h_nchw, c_nchw: (B, Ch, H, W)
    w_ih: (4*Ch, Cin, 1, 1)  w_hh: (4*Ch, Ch, 1, 1)   b_*: (4*Ch,)
    Returns (h_new, c_new) in NCHW.

    compute_dtype : matmul streaming dtype (bf16 default; float32 is the exact
                    escape hatch).
    h_out_dtype   : dtype of h_new (None -> same as h input).  Use bf16 when
                    chaining timesteps to halve h writeback bytes.
    alias_state   : alias c (and h, when dtypes match) outputs onto the inputs
                    for in-place recurrent updates.  Caller must donate buffers.
    """
    B, Cin, H, W = x_nchw.shape
    Ch = c_nchw.shape[1]
    HW = H * W
    assert w_ih.shape[2:] == (1, 1) and w_hh.shape[2:] == (1, 1), \
        "only kernel_size=(1,1) is supported"
    h_out_dtype = h_nchw.dtype if h_out_dtype is None else h_out_dtype

    # ---- lane-dense spatial axis: pad H*W up to a multiple of 128 -------------
    hw_pad = ((HW + 127) // 128) * 128
    pad = hw_pad - HW

    # Channel-major (B, C, H*W) views -- free reshapes, no transpose passes and
    # (crucially) NO wrapper dtype cast of the activations.
    x3 = x_nchw.reshape(B, Cin, HW)
    h3 = h_nchw.reshape(B, Ch, HW)
    c3 = c_nchw.reshape(B, Ch, HW)
    if pad:
        pad_cfg = ((0, 0), (0, 0), (0, pad))
        x3 = jnp.pad(x3, pad_cfg)
        h3 = jnp.pad(h3, pad_cfg)
        c3 = jnp.pad(c3, pad_cfg)

    # (4Ch, Cin, 1, 1) -> (4Ch, Cin): already channel-major; weights are tiny,
    # so casting them in the wrapper costs nothing.
    wih2 = w_ih[:, :, 0, 0].astype(compute_dtype)
    whh2 = w_hh[:, :, 0, 0].astype(compute_dtype)
    bias = (b_ih + b_hh).astype(jnp.float32).reshape(4 * Ch, 1)

    # ---- generation-aware VMEM budget & tile selection ------------------------
    cap = _vmem_capacity_bytes()
    if cap >= 96 * 2**20:                     # v5e / v6e class (128 MiB)
        budget = min(int(0.85 * cap), 110 * 2**20)
    else:                                     # v7x class (64 MiB) or smaller
        budget = int(0.70 * cap)

    x_it = jnp.dtype(x_nchw.dtype).itemsize
    h_it = jnp.dtype(h_nchw.dtype).itemsize
    c_it = jnp.dtype(c_nchw.dtype).itemsize
    ho_it = jnp.dtype(h_out_dtype).itemsize
    cd_it = jnp.dtype(compute_dtype).itemsize

    def per_thw_bytes(t):
        io = (Cin * t * x_it + Ch * t * h_it + Ch * t * c_it   # x, h, c tiles
              + Ch * t * ho_it + Ch * t * 4)                   # h_out, c_out tiles
        io *= 2                                                # double-buffered
        interm = (4 * Ch * t * 4                               # gates (f32)
                  + 6 * Ch * t * 4                             # i,f,g,o,c_new,h_new
                  + (Cin + Ch) * t * cd_it)                    # in-kernel casts
        return io + interm

    # Weights + lane-padded bias (x2: not marked single-buffered -- keeping the
    # default pipeline mode for compile safety; revisit with pl.Buffered(1)).
    fixed_bytes = 2 * (4 * Ch * (Cin + Ch) * cd_it) + 2 * (4 * Ch * 128 * 4)

    t_hw = _pick_tile(hw_pad, B, per_thw_bytes, fixed_bytes, budget,
                      t_hw_max, min_grid_steps)
    n_hw = hw_pad // t_hw
    vmem_limit = int(budget)

    kernel = functools.partial(_convlstm_kernel, hidden_size=Ch,
                               compute_dtype=compute_dtype)

    # Optional in-place state update (useful when unrolled over time).
    io_aliases = {}
    if alias_state:
        io_aliases[2] = 1                                  # c -> c_out
        if jnp.dtype(h_out_dtype) == jnp.dtype(h3.dtype):
            io_aliases[1] = 0                              # h -> h_out

    h_out, c_out = pl.pallas_call(
        kernel,
        out_shape=(
            jax.ShapeDtypeStruct((B, Ch, hw_pad), h_out_dtype),
            jax.ShapeDtypeStruct((B, Ch, hw_pad), c_nchw.dtype),
        ),
        grid_spec=pltpu.PrefetchScalarGridSpec(
            num_scalar_prefetch=0,
            grid=(B, n_hw),
            in_specs=[
                pl.BlockSpec((None, Cin, t_hw), lambda b, j: (b, 0, j)),  # x
                pl.BlockSpec((None, Ch, t_hw), lambda b, j: (b, 0, j)),   # h
                pl.BlockSpec((None, Ch, t_hw), lambda b, j: (b, 0, j)),   # c
                pl.BlockSpec((4 * Ch, Cin), lambda b, j: (0, 0)),         # W_ih (resident)
                pl.BlockSpec((4 * Ch, Ch), lambda b, j: (0, 0)),          # W_hh (resident)
                pl.BlockSpec((4 * Ch, 1), lambda b, j: (0, 0)),           # bias
            ],
            out_specs=[
                pl.BlockSpec((None, Ch, t_hw), lambda b, j: (b, 0, j)),   # h_out
                pl.BlockSpec((None, Ch, t_hw), lambda b, j: (b, 0, j)),   # c_out
            ],
        ),
        compiler_params=pltpu.CompilerParams(
            dimension_semantics=("parallel", "parallel"),
            vmem_limit_bytes=vmem_limit),
        input_output_aliases=io_aliases,
    )(x3, h3, c3, wih2, whh2, bias)

    if pad:
        h_out = h_out[:, :, :HW]
        c_out = c_out[:, :, :HW]
    return h_out.reshape(B, Ch, H, W), c_out.reshape(B, Ch, H, W)


def _reference(x, h, c, w_ih, w_hh, b_ih, b_hh):
    # Pure-JAX reference (1x1 conv == per-pixel linear), NCHW semantics, f32 math.
    def conv1x1(inp, w, b):
        out = jnp.einsum('bchw,oc->bohw',
                         inp.astype(jnp.float32),
                         w[:, :, 0, 0].astype(jnp.float32),
                         precision=jax.lax.Precision.HIGHEST)
        return out + b[None, :, None, None]
    gates = conv1x1(x, w_ih, b_ih) + conv1x1(h, w_hh, b_hh)
    i, f, g, o = jnp.split(gates, 4, axis=1)
    i, f, g, o = jax.nn.sigmoid(i), jax.nn.sigmoid(f), jnp.tanh(g), jax.nn.sigmoid(o)
    c_ = f * c.astype(jnp.float32) + i * g
    h_ = o * jnp.tanh(c_)
    return h_, c_


if __name__ == "__main__":
    key = jax.random.PRNGKey(0)
    B, Cin, Hh, Ww = 2, 4, 16, 16
    Chid = 32
    ks = jax.random.split(key, 12)

    x = jax.random.normal(ks[0], (B, Cin, Hh, Ww), jnp.float32)
    h0 = jax.random.normal(ks[1], (B, Chid, Hh, Ww), jnp.float32)
    c0 = jax.random.normal(ks[2], (B, Chid, Hh, Ww), jnp.float32)

    # Deterministic parameter init (kaiming_normal fan_out for weights,
    # Conv2d-default uniform for biases) -- synthetic, not a checkpoint.
    fan_out = 4 * Chid * 1 * 1
    std = (2.0 / fan_out) ** 0.5
    w_ih = jax.random.normal(ks[3], (4 * Chid, Cin, 1, 1), jnp.float32) * std
    w_hh = jax.random.normal(ks[4], (4 * Chid, Chid, 1, 1), jnp.float32) * std
    b_ih = jax.random.uniform(ks[5], (4 * Chid,), jnp.float32,
                              -1.0 / Cin ** 0.5, 1.0 / Cin ** 0.5)
    b_hh = jax.random.uniform(ks[6], (4 * Chid,), jnp.float32,
                              -1.0 / Chid ** 0.5, 1.0 / Chid ** 0.5)

    q = lambda a: a.astype(jnp.bfloat16).astype(jnp.float32)

    # --- 1) default path: f32 state in / f32 state out ------------------------
    h_new, c_new = conv_lstm_cell_pallas(x, h0, c0, w_ih, w_hh, b_ih, b_hh)
    jax.block_until_ready((h_new, c_new))
    assert h_new.shape == (B, Chid, Hh, Ww) and c_new.shape == (B, Chid, Hh, Ww)

    # Tight check vs. a reference computed on the same bf16-quantized x/h/weights
    # (isolates kernel mechanics from the intentional bf16 streaming quantization).
    h_refq, c_refq = _reference(q(x), q(h0), c0, q(w_ih), q(w_hh), b_ih, b_hh)
    assert jnp.allclose(h_new, h_refq, atol=2e-3, rtol=2e-3), \
        f"h mismatch (quantized ref): {jnp.max(jnp.abs(h_new - h_refq))}"
    assert jnp.allclose(c_new, c_refq, atol=2e-3, rtol=2e-3), \
        f"c mismatch (quantized ref): {jnp.max(jnp.abs(c_new - c_refq))}"

    # Loose end-to-end check against the full-f32 reference (bf16 streaming error).
    h_ref, c_ref = _reference(x, h0, c0, w_ih, w_hh, b_ih, b_hh)
    assert jnp.allclose(h_new, h_ref, atol=5e-2), \
        f"h mismatch (f32 ref): {jnp.max(jnp.abs(h_new - h_ref))}"
    assert jnp.allclose(c_new, c_ref, atol=5e-2), \
        f"c mismatch (f32 ref): {jnp.max(jnp.abs(c_new - c_ref))}"

    # --- 2) bf16 h writeback (chained-timestep configuration) -----------------
    h_bf, c_bf = conv_lstm_cell_pallas(x, h0, c0, w_ih, w_hh, b_ih, b_hh,
                                       h_out_dtype=jnp.bfloat16)
    jax.block_until_ready((h_bf, c_bf))
    assert h_bf.dtype == jnp.bfloat16
    assert jnp.allclose(h_bf.astype(jnp.float32), h_refq, atol=1e-2), \
        f"h mismatch (bf16 out): {jnp.max(jnp.abs(h_bf.astype(jnp.float32) - h_refq))}"
    assert jnp.allclose(c_bf, c_refq, atol=2e-3, rtol=2e-3)

    # --- 3) odd spatial size -> lane-padding path ------------------------------
    Hp, Wp = 10, 10
    xp = jax.random.normal(ks[7], (B, Cin, Hp, Wp), jnp.float32)
    hp = jax.random.normal(ks[8], (B, Chid, Hp, Wp), jnp.float32)
    cp = jax.random.normal(ks[9], (B, Chid, Hp, Wp), jnp.float32)
    hp_new, cp_new = conv_lstm_cell_pallas(xp, hp, cp, w_ih, w_hh, b_ih, b_hh)
    jax.block_until_ready((hp_new, cp_new))
    hp_refq, cp_refq = _reference(q(xp), q(hp), cp, q(w_ih), q(w_hh), b_ih, b_hh)
    assert hp_new.shape == (B, Chid, Hp, Wp)
    assert jnp.allclose(hp_new, hp_refq, atol=2e-3, rtol=2e-3), \
        f"h mismatch (padded): {jnp.max(jnp.abs(hp_new - hp_refq))}"
    assert jnp.allclose(cp_new, cp_refq, atol=2e-3, rtol=2e-3), \
        f"c mismatch (padded): {jnp.max(jnp.abs(cp_new - cp_refq))}"

    print("KERNEL_OK")
</pallas_src>

<mosaic_0001>
module attributes {stable_mosaic.version = 11 : i64} {
  func.func @_convlstm_kernel(%arg0: i32, %arg1: i32, %arg2: memref<1x4x256xf32, #tpu.memory_space<vmem>>, %arg3: memref<1x32x256xf32, #tpu.memory_space<vmem>>, %arg4: memref<1x32x256xf32, #tpu.memory_space<vmem>>, %arg5: memref<128x4xbf16, #tpu.memory_space<vmem>>, %arg6: memref<128x32xbf16, #tpu.memory_space<vmem>>, %arg7: memref<128x1xf32, #tpu.memory_space<vmem>>, %arg8: memref<1x32x256xf32, #tpu.memory_space<vmem>>, %arg9: memref<1x32x256xf32, #tpu.memory_space<vmem>>) attributes {dimension_semantics = [#tpu.dimension_semantics<parallel>, #tpu.dimension_semantics<parallel>], iteration_bounds = array<i64: 2, 1>, scalar_prefetch = 0 : i64, scratch_operands = 0 : i64, tpu.core_type = #tpu.core_type<tc>, window_params = [{transform_indices = @transform_0, window_bounds = array<i64: 1, 4, 256>}, {transform_indices = @transform_1, window_bounds = array<i64: 1, 32, 256>}, {transform_indices = @transform_2, window_bounds = array<i64: 1, 32, 256>}, {pipeline_mode = #tpu.pipeline_mode<synchronous>, transform_indices = @transform_3, window_bounds = array<i64: 128, 4>}, {pipeline_mode = #tpu.pipeline_mode<synchronous>, transform_indices = @transform_4, window_bounds = array<i64: 128, 32>}, {pipeline_mode = #tpu.pipeline_mode<synchronous>, transform_indices = @transform_5, window_bounds = array<i64: 128, 1>}, {transform_indices = @transform_6, window_bounds = array<i64: 1, 32, 256>}, {transform_indices = @transform_7, window_bounds = array<i64: 1, 32, 256>}]} {
    %c0 = arith.constant 0 : index
    %c0_0 = arith.constant 0 : index
    %c0_1 = arith.constant 0 : index
    %0 = vector.load %arg2[%c0, %c0_0, %c0_1] : memref<1x4x256xf32, #tpu.memory_space<vmem>>, vector<1x4x256xf32>
    %1 = vector.shape_cast %0 : vector<1x4x256xf32> to vector<4x256xf32>
    %2 = arith.truncf %1 : vector<4x256xf32> to vector<4x256xbf16>
    %c0_2 = arith.constant 0 : index
    %c0_3 = arith.constant 0 : index
    %c0_4 = arith.constant 0 : index
    %3 = vector.load %arg3[%c0_2, %c0_3, %c0_4] : memref<1x32x256xf32, #tpu.memory_space<vmem>>, vector<1x32x256xf32>
    %4 = vector.shape_cast %3 : vector<1x32x256xf32> to vector<32x256xf32>
    %5 = arith.truncf %4 : vector<32x256xf32> to vector<32x256xbf16>
    %c0_5 = arith.constant 0 : index
    %c0_6 = arith.constant 0 : index
    %6 = vector.load %arg5[%c0_5, %c0_6] : memref<128x4xbf16, #tpu.memory_space<vmem>>, vector<128x4xbf16>
    %cst = arith.constant dense<0.000000e+00> : vector<128x256xf32>
    %7 = tpu.matmul %6, %2, %cst {dimension_numbers = #tpu.dot_dimension_numbers<[1], [0], [0], [1], [0, 0, 1, 1], [], []>} : vector<128x4xbf16>, vector<4x256xbf16>, vector<128x256xf32> -> vector<128x256xf32>
    %c0_7 = arith.constant 0 : index
    %c0_8 = arith.constant 0 : index
    %8 = vector.load %arg6[%c0_7, %c0_8] : memref<128x32xbf16, #tpu.memory_space<vmem>>, vector<128x32xbf16>
    %cst_9 = arith.constant dense<0.000000e+00> : vector<128x256xf32>
    %9 = tpu.matmul %8, %5, %cst_9 {dimension_numbers = #tpu.dot_dimension_numbers<[1], [0], [0], [1], [0, 0, 1, 1], [], []>} : vector<128x32xbf16>, vector<32x256xbf16>, vector<128x256xf32> -> vector<128x256xf32>
    %10 = arith.addf %7, %9 : vector<128x256xf32>
    %c0_10 = arith.constant 0 : index
    %c0_11 = arith.constant 0 : index
    %11 = vector.load %arg7[%c0_10, %c0_11] : memref<128x1xf32, #tpu.memory_space<vmem>>, vector<128x1xf32>
    %12 = vector.broadcast %11 : vector<128x1xf32> to vector<128x256xf32>
    %13 = arith.addf %10, %12 : vector<128x256xf32>
    %14 = vector.extract_strided_slice %13 {offsets = [0, 0], sizes = [32, 256], strides = [1, 1]} : vector<128x256xf32> to vector<32x256xf32>
    %cst_12 = arith.constant 5.000000e-01 : f32
    %15 = vector.broadcast %cst_12 : f32 to vector<32x256xf32>
    %16 = arith.mulf %15, %14 : vector<32x256xf32>
    %17 = math.tanh %16 : vector<32x256xf32>
    %cst_13 = arith.constant 1.000000e+00 : f32
    %18 = vector.broadcast %cst_13 : f32 to vector<32x256xf32>
    %19 = arith.addf %17, %18 : vector<32x256xf32>
    %cst_14 = arith.constant 5.000000e-01 : f32
    %20 = vector.broadcast %cst_14 : f32 to vector<32x256xf32>
    %21 = arith.mulf %20, %19 : vector<32x256xf32>
    %22 = vector.extract_strided_slice %13 {offsets = [32, 0], sizes = [32, 256], strides = [1, 1]} : vector<128x256xf32> to vector<32x256xf32>
    %cst_15 = arith.constant 5.000000e-01 : f32
    %23 = vector.broadcast %cst_15 : f32 to vector<32x256xf32>
    %24 = arith.mulf %23, %22 : vector<32x256xf32>
    %25 = math.tanh %24 : vector<32x256xf32>
    %cst_16 = arith.constant 1.000000e+00 : f32
    %26 = vector.broadcast %cst_16 : f32 to vector<32x256xf32>
    %27 = arith.addf %25, %26 : vector<32x256xf32>
    %cst_17 = arith.constant 5.000000e-01 : f32
    %28 = vector.broadcast %cst_17 : f32 to vector<32x256xf32>
    %29 = arith.mulf %28, %27 : vector<32x256xf32>
    %30 = vector.extract_strided_slice %13 {offsets = [64, 0], sizes = [32, 256], strides = [1, 1]} : vector<128x256xf32> to vector<32x256xf32>
    %31 = math.tanh %30 : vector<32x256xf32>
    %32 = vector.extract_strided_slice %13 {offsets = [96, 0], sizes = [32, 256], strides = [1, 1]} : vector<128x256xf32> to vector<32x256xf32>
    %cst_18 = arith.constant 5.000000e-01 : f32
    %33 = vector.broadcast %cst_18 : f32 to vector<32x256xf32>
    %34 = arith.mulf %33, %32 : vector<32x256xf32>
    %35 = math.tanh %34 : vector<32x256xf32>
    %cst_19 = arith.constant 1.000000e+00 : f32
    %36 = vector.broadcast %cst_19 : f32 to vector<32x256xf32>
    %37 = arith.addf %35, %36 : vector<32x256xf32>
    %cst_20 = arith.constant 5.000000e-01 : f32
    %38 = vector.broadcast %cst_20 : f32 to vector<32x256xf32>
    %39 = arith.mulf %38, %37 : vector<32x256xf32>
    %c0_21 = arith.constant 0 : index
    %c0_22 = arith.constant 0 : index
    %c0_23 = arith.constant 0 : index
    %40 = vector.load %arg4[%c0_21, %c0_22, %c0_23] : memref<1x32x256xf32, #tpu.memory_space<vmem>>, vector<1x32x256xf32>
    %41 = vector.shape_cast %40 : vector<1x32x256xf32> to vector<32x256xf32>
    %42 = arith.mulf %29, %41 : vector<32x256xf32>
    %43 = arith.mulf %21, %31 : vector<32x256xf32>
    %44 = arith.addf %42, %43 : vector<32x256xf32>
    %45 = math.tanh %44 : vector<32x256xf32>
    %46 = arith.mulf %39, %45 : vector<32x256xf32>
    %c0_24 = arith.constant 0 : index
    %c0_25 = arith.constant 0 : index
    %c0_26 = arith.constant 0 : index
    %47 = vector.load %arg8[%c0_24, %c0_25, %c0_26] : memref<1x32x256xf32, #tpu.memory_space<vmem>>, vector<1x32x256xf32>
    %48 = vector.shape_cast %47 : vector<1x32x256xf32> to vector<32x256xf32>
    %49 = vector.shape_cast %46 : vector<32x256xf32> to vector<1x32x256xf32>
    tpu.vector_store %arg8[%c0_24, %c0_25, %c0_26], %49 {strides = array<i32>} : memref<1x32x256xf32, #tpu.memory_space<vmem>>, vector<1x32x256xf32>,
    %c0_27 = arith.constant 0 : index
    %c0_28 = arith.constant 0 : index
    %c0_29 = arith.constant 0 : index
    %50 = vector.load %arg9[%c0_27, %c0_28, %c0_29] : memref<1x32x256xf32, #tpu.memory_space<vmem>>, vector<1x32x256xf32>
    %51 = vector.shape_cast %50 : vector<1x32x256xf32> to vector<32x256xf32>
    %52 = vector.shape_cast %44 : vector<32x256xf32> to vector<1x32x256xf32>
    tpu.vector_store %arg9[%c0_27, %c0_28, %c0_29], %52 {strides = array<i32>} : memref<1x32x256xf32, #tpu.memory_space<vmem>>, vector<1x32x256xf32>,
    return
  }
  func.func @transform_0(%arg0: i32, %arg1: i32) -> (i32, i32, i32) {
    %c0_i32 = arith.constant 0 : i32
    %c0_i32_0 = arith.constant 0 : i32
    return %arg0, %c0_i32, %arg1 : i32, i32, i32
  }
  func.func @transform_1(%arg0: i32, %arg1: i32) -> (i32, i32, i32) {
    %c0_i32 = arith.constant 0 : i32
    %c0_i32_0 = arith.constant 0 : i32
    return %arg0, %c0_i32, %arg1 : i32, i32, i32
  }
  func.func @transform_2(%arg0: i32, %arg1: i32) -> (i32, i32, i32) {
    %c0_i32 = arith.constant 0 : i32
    %c0_i32_0 = arith.constant 0 : i32
    return %arg0, %c0_i32, %arg1 : i32, i32, i32
  }
  func.func @transform_3(%arg0: i32, %arg1: i32) -> (i32, i32) {
    %c0_i32 = arith.constant 0 : i32
    %c0_i32_0 = arith.constant 0 : i32
    %c0_i32_1 = arith.constant 0 : i32
    return %c0_i32, %c0_i32_0 : i32, i32
  }
  func.func @transform_4(%arg0: i32, %arg1: i32) -> (i32, i32) {
    %c0_i32 = arith.constant 0 : i32
    %c0_i32_0 = arith.constant 0 : i32
    %c0_i32_1 = arith.constant 0 : i32
    return %c0_i32, %c0_i32_0 : i32, i32
  }
  func.func @transform_5(%arg0: i32, %arg1: i32) -> (i32, i32) {
    %c0_i32 = arith.constant 0 : i32
    %c0_i32_0 = arith.constant 0 : i32
    %c0_i32_1 = arith.constant 0 : i32
    return %c0_i32, %c0_i32_0 : i32, i32
  }
  func.func @transform_6(%arg0: i32, %arg1: i32) -> (i32, i32, i32) {
    %c0_i32 = arith.constant 0 : i32
    %c0_i32_0 = arith.constant 0 : i32
    return %arg0, %c0_i32, %arg1 : i32, i32, i32
  }
  func.func @transform_7(%arg0: i32, %arg1: i32) -> (i32, i32, i32) {
    %c0_i32 = arith.constant 0 : i32
    %c0_i32_0 = arith.constant 0 : i32
    return %arg0, %c0_i32, %arg1 : i32, i32, i32
  }
}

</mosaic_0001>

<bundles_post_ra>
// kernel: tpu_custom_call.1
= control target key start
LH: loop header
LB: loop body
LE: loop exit
PB: predicated region body
PF: predicated region fallthrough
CT: control target
= control target key end

     0   :  { %13 = vsyncpa [#allocation3], 0  ;;  %s2158_s0 = inlined_call_operand.hbm [shape: f32[2,4,256], index: 0, kind: input, shape index: {}]   ;;  %s2159_s1 = inlined_call_operand.vmem [shape: f32[2,32,256], index: 1, kind: input, shape index: {}]   ;;  %s2160_s2 = inlined_call_operand.vmem [shape: f32[2,32,256], index: 2, kind: input, shape index: {}]   ;;  %s2161_s3 = inlined_call_operand.vmem [shape: bf16[128,4], index: 3, kind: input, shape index: {}]   ;;  %s2162_s4 = inlined_call_operand.vmem [shape: bf16[128,32], index: 4, kind: input, shape index: {}]   ;;  %s2163_s5 = inlined_call_operand.vmem [shape: f32[128,1], index: 5, kind: input, shape index: {}]   ;;  %s2164_s6 = inlined_call_operand.hbm [shape: f32[2,32,256], index: 6, kind: output, shape index: {0}]   ;;  %s2165_s7 = inlined_call_operand.hbm [shape: f32[2,32,256], index: 7, kind: output, shape index: {1}]  }
   0x1   :  { %15 = vsyncpa [#allocation3 + $0x1], 0 }
   0x2   :  { %16 = vsyncpa [#allocation4], 0 }
   0x3   :  { %18 = vsyncpa [#allocation4 + $0x1], 0 }
   0x4   :  { %19 = vsyncpa [#allocation7], 0 }
   0x5   :  { %21 = vsyncpa [#allocation7 + $0x1], 0  ;;  %s1769_s24 = smov 0   ;;  %s1771_s25 = smov 0  }
   0x6   :  { %s1773_s26 = smov 0   ;;  %s1775_s27 = smov 0  }
   0x7   :  { %s1777_s28 = smov 0   ;;  %s1779_s29 = smov 0  }
   0x8 LB: > { %s1287_s30 = sadd.s32 4294967295, %s1724_s29   ;;  %s1288_s8 = sadd.s32 4294967294, %s1724_s29   ;;  %s1724_s29 = sphi %s1779_s29, %s27_s29   ;;  %s1720_s28 = sphi %s1777_s28, %s2178_s28   ;;  %s1716_s27 = sphi %s1775_s27, %s2177_s27   ;;  %s1712_s26 = sphi %s1773_s26, %s2176_s26   ;;  %s1708_s25 = sphi %s1771_s25, %s2175_s25   ;;  %s1704_s24 = sphi %s1769_s24, %s2174_s24  }
   0x9   : > { %s39_s9 = sadd.s32 1, %s1720_s28  ;;  %s48_s10 = sadd.s32 1, %s1712_s26 }
   0xa   : > { %p41_p0 = scmp.ge.s32.totalorder %s39_s9, 2  ;;  %p55_p1 = scmp.ne.s32.totalorder %s1712_s26, %s1708_s25 }
   0xb   : > { %p56_p2 = scmp.eq.s32.totalorder %s1724_s29, 0  ;;  %p61_p3 = scmp.ne.s32.totalorder %s1708_s25, %s1704_s24 }
   0xc   : > { %s2180_s9 = smov (%p41_p0, %s39_s9), 0  ;;  %p62_p5 = scmp.eq.s32.totalorder %s1287_s30, 0 }
   0xd   : > { %p1810_p4 = por %p56_p2, %p55_p1  ;;  %s43_s12 = ssub.s32 %s1720_s28, %s2180_s9 }
   0xe   : > { %p206_p6 = scmp.eq.s32.totalorder %s1287_s30, 1  ;;  %p46_p7 = scmp.eq.s32.totalorder %s43_s12, 0 }
   0xf   : > { %p1816_p8 = por %p62_p5, %p61_p3  ;;  %p212_p10 = scmp.eq.s32.totalorder %s1288_s8, 1 }
  0x10   : > { %p1820_p9 = por %p206_p6, %p55_p1  ;;  %p1290_p12 = scmp.ge.s32.totalorder %s1724_s29, 2 }
  0x11   : > { %s1825_s15 = scalar_select %p46_p7, %s1712_s26, %s48_s10  }
  0x12   : > { %p1827_p11 = por %p212_p10, %p61_p3  ;;  %p1444_p13 = scmp.lt.s32.totalorder %s1724_s29, 2 }
  0x13   : > { %s269_s17 = sand.u32 1, %s1712_s26   ;;  %s1406_s19 = sshll.u32 %s1720_s28, 3 }
  0x14   : > { %s1291_s18 = sshll.u32 %s269_s17, 3  ;;  %s280_s22 = scalar_lea.hbm %s2158_s0, %s1406_s19 }
  0x15   : > { %s273_s23 = scalar_lea.vmem [#allocation2], %s1291_s18  ;;  %s282_s12 = sshll.u32 %s280_s22, 4  ;;  %s283_s12 = int_to_ptr.hbm [resolvable:$true] %s282_s12 }
  0x16   : > { %s284_s30 = sshll.u32 %s273_s23, 4  ;;  %p1434_p0 = pnand %p1444_p13, %p1810_p4  ;;  %s285_s30 = int_to_ptr.vmem [resolvable:$true] %s284_s30 }
  0x17   : > { %p1294_p1 = scmp.ge.s32.totalorder %s1724_s29, 1  ;;  %p315_p2 = scmp.lt.s32.totalorder %s1724_s29, 3 }
  0x18   : > { %s270_s8 = scalar_lea.sflag [#allocation3], %s269_s17 }
  0x19   : > { %1436 = dma.hbm_to_vmem [thread:$0]  (!%p1434_p0), %s283_s12, 128, %s285_s30, %s270_s8  }
  0x1a   : > { %p316_p3 = pnand %p1294_p1, %p315_p2 }
  0x1b   : > { %s1843_s10 = sand.u32 (!%p316_p3), 1, %s1708_s25  }
  0x1c   : > { %319 = sbr.rel (%p316_p3) target bundleno = 324 (0x144), region = 44  ;;  %s1295_s19 = sshll.u32 (!%p316_p3), %s1843_s10, 3 }
  0x1d   : > { %s322_s18 = scalar_lea.sflag (!%p316_p3), [#allocation3], %s1843_s10  ;;  %s325_s20 = scalar_lea.vmem (!%p316_p3), [#allocation2], %s1295_s19 }
  0x21   : > { %1691 = dma.done.wait (%p1816_p8), %s322_s18, 128  }
  0x22   : > { %1693 = vsyncadd (%p1816_p8), %s322_s18, 4294967168  ;;  %p382_p4 = scmp.lt.s32.totalorder %s1716_s27, 1  ;;  %v404_v10 = vld [vmem:[%s325_s20] sm:$0xff]  ;;  %v1726_v11 = vmov 0   ;;  %v790_v14 = vld [vmem:[%s2163_s5] sm:$0xff]  ;;  %vm497_vm0 = vcmask 261120  }
  0x23   : > { %1497 = vset.pattern.permute.xlu0 %v1726_v11  ;;  %1498 = vset.pattern.permute.xlu1 %v1726_v11  ;;  %406 = vst [vmem:[#allocation1] ss:$2 sm:$0xff] %v404_v10  ;;  %v1417_v15 = vld [vmem:[%s2162_s4] sm:$0xff]  ;;  %vm685_vm1 = vcmask 1041408   ;;  %v791_v16 = vld [vmem:[%s2163_s5 + $0x8] sm:$0xff]  ;;  %vm660_vm2 = vcmask 31744  }
  0x24   : > { %s1853_s11 = scalar_select %p382_p4, %s1716_s27, 1  ;;  %1499 = vset.pattern.permute.xlu2 %v1726_v11  ;;  %808 = vperm.xlu0 %1497, %v790_v14   ;;  %v1409_v23 = vld [vmem:[%s2161_s3] sm:$0xff]  ;;  %v792_v24 = vld [vmem:[%s2163_s5 + $0x10] sm:$0xff]  ;;  %v1418_v25 = vld [vmem:[%s2162_s4 + $0x8] sm:$0xff] }
  0x25   : > { %818 = vperm.xlu1 %1498, %v792_v24   ;;  %v793_v26 = vld [vmem:[%s2163_s5 + $0x18] sm:$0xff]  ;;  %v1410_v27 = vld [vmem:[%s2161_s3 + $0x8] sm:$0xff]  ;;  %v1419_v28 = vld [vmem:[%s2162_s4 + $0x10] sm:$0xff]  ;;  %s2166_s21 = sshll.u32 %s1716_s27, 6  ;;  %s1092_s8 = scalar_lea.sflag [#allocation7], %s1843_s10 }
  0x26   : > { %s1407_s17 = sshll.u32 %s1853_s11, 6  ;;  %v1411_v29 = vld [vmem:[%s2161_s3 + $0x10] sm:$0xff]  ;;  %v794_v31 = vld [vmem:[%s2163_s5 + $0x20] sm:$0xff]  ;;  %v797_v32 = vld [vmem:[%s2163_s5 + $0x38] sm:$0xff]  ;;  %s2167_s11 = sshll.u32 %s1843_s10, 6 }
  0x27   : > { %s389_s23 = scalar_lea.vmem %s2159_s1, %s1407_s17  ;;  %v796_v30 = vld [vmem:[%s2163_s5 + $0x30] sm:$0xff]  ;;  %828 = vperm.xlu2 %1499, %v794_v31   ;;  %v1420_v33 = vld [vmem:[%s2162_s4 + $0x18] sm:$0xff]  ;;  %v795_v35 = vld [vmem:[%s2163_s5 + $0x28] sm:$0xff]  ;;  %s2012_s20 = scalar_lea.vmem %s2160_s2, %s1407_s17 }
  0x28   : > { %v417_v0 = vld [vmem:[%s389_s23 + $0x20] sm:$0xff]  ;;  %v419_v1 = vld [vmem:[%s389_s23 + $0x30] sm:$0xff]  ;;  %v418_v2 = vld [vmem:[%s389_s23 + $0x28] sm:$0xff]  ;;  %s2033_s17 = scalar_lea.vmem [#allocation6], %s2167_s11  ;;  %s1124_s13 = scalar_lea.hbm %s2165_s7, %s2166_s21 }
  0x29   : > { %v423_v3 = vpack.c.bf16 %v419_v1, %v417_v0  ;;  %v420_v4 = vld [vmem:[%s389_s23 + $0x38] sm:$0xff]  ;;  %v413_v5 = vld [vmem:[%s389_s23] sm:$0xff]  ;;  %v415_v6 = vld [vmem:[%s389_s23 + $0x10] sm:$0xff]  ;;  %s1125_s30 = sshll.u32 %s2033_s17, 4  ;;  %s1127_s12 = sshll.u32 %s1124_s13, 4  ;;  %s2074_s30 = int_to_ptr.vmem [resolvable:$true] %s1125_s30  ;;  %s1128_s12 = int_to_ptr.hbm [resolvable:$true] %s1127_s12 }
  0x2a   : > { %v424_v7 = vpack.c.bf16 %v420_v4, %v418_v2  ;;  %v414_v8 = vld [vmem:[%s389_s23 + $0x8] sm:$0xff]  ;;  %v416_v9 = vld [vmem:[%s389_s23 + $0x18] sm:$0xff]  ;;  %v421_v12 = vpack.c.bf16 %v415_v6, %v413_v5  ;;  %v407_v17 = vld.sshfl [vmem:[#allocation1] sm:$0xff pattern:$0x75316420]  ;;  %s1624_s19 = sshra.s32 %s1128_s12, 4  ;;  %s1625_s19 = int_to_ptr.hbm [resolvable:$true] %s1624_s19 }
  0x2b   : > { %528 = vmatpush.bf16.msra.mxu0 %v423_v3  ;;  %v422_v13 = vpack.c.bf16 %v416_v9, %v414_v8  ;;  %v408_v18 = vld.sshfl [vmem:[#allocation1 + $0x8] sm:$0xff pattern:$0x75316420]  ;;  %v411_v19 = vpack.c.bf16 %v407_v17, %v407_v17  ;;  %v1412_v34 = vld [vmem:[%s2161_s3 + $0x18] sm:$0xff]  ;;  %v1421_v37 = vld [vmem:[%s2162_s4 + $0x20] sm:$0xff]  ;;  %s1626_s18 = scalar_lea.hbm %s1625_s19, 64  ;;  %p1631_p8 = scmp.lt.s32.totalorder %s1625_s19, %s2165_s7 }
  0x2c   : > { %577 = vmatpush.bf16.msra.mxu1 %v424_v7  ;;  %v412_v20 = vpack.c.bf16 %v408_v18, %v408_v18  ;;  %813 = vperm.xlu0 %1497, %v791_v16   ;;  %v799_v36 = vld [vmem:[%s2163_s5 + $0x48] sm:$0xff]  ;;  %v802_v38 = vld [vmem:[%s2163_s5 + $0x60] sm:$0xff]  ;;  %v800_v40 = vld [vmem:[%s2163_s5 + $0x50] sm:$0xff]  ;;  %p1627_p5 = scmp.ne.s32.totalorder %s1625_s19, %s1626_s18  ;;  %s1630_s23 = scalar_lea.hbm %s2165_s7, 128 }
  0x2d   : > { %v687_v21 = vsel %vm685_vm1, %v411_v19, 0  ;;  %823 = vperm.xlu1 %1498, %v793_v26   ;;  %v1413_v39 = vld [vmem:[%s2161_s3 + $0x20] sm:$0xff]  ;;  %v805_v41 = vld [vmem:[%s2163_s5 + $0x78] sm:$0xff]  ;;  %v1422_v43 = vld [vmem:[%s2162_s4 + $0x28] sm:$0xff]  ;;  %p1632_p10 = scmp.lt.s32.totalorder %s1630_s23, %s1626_s18 }
  0x2e   : > { %v690_v22 = vsel %vm685_vm1, %v412_v20, 0  ;;  %699 = vmatpush.bf16.msra.mxu2 %v687_v21  ;;  %v798_v42 = vld [vmem:[%s2163_s5 + $0x40] sm:$0xff]  ;;  %v803_v44 = vld [vmem:[%s2163_s5 + $0x68] sm:$0xff]  ;;  %v801_v46 = vld [vmem:[%s2163_s5 + $0x58] sm:$0xff]  ;;  %p1628_p6 = pnand %p1627_p5, %p1820_p9 }
  0x2f   : > { %529 = vmatpush.bf16.msra.mxu0 %v421_v12  ;;  %748 = vmatpush.bf16.msra.mxu3 %v690_v22  ;;  %v1414_v45 = vld [vmem:[%s2161_s3 + $0x28] sm:$0xff]  ;;  %v1423_v47 = vld [vmem:[%s2162_s4 + $0x30] sm:$0xff]  ;;  %v1424_v50 = vld [vmem:[%s2162_s4 + $0x38] sm:$0xff]  ;;  %p1633_p13 = por %p1632_p10, %p1631_p8 }
  0x30   : > { %578 = vmatpush.bf16.msra.mxu1 %v422_v13  ;;  %833 = vperm.xlu2 %1499, %v795_v35   ;;  %v804_v48 = vld [vmem:[%s2163_s5 + $0x70] sm:$0xff]  ;;  %v1416_v51 = vld [vmem:[%s2161_s3 + $0x38] sm:$0xff]  ;;  %p1629_p7 = pneg %p1628_p6 }
  0x31   : > { %1382 = vmatmul.msk.bf16.vlgmr.msra.gmra.mxu2 %vm660_vm2, %v1409_v23  ;;  %v1415_v49 = vld [vmem:[%s2161_s3 + $0x30] sm:$0xff] }
  0x32   : > { %1334 = vmatmul.msk.bf16.vlgmr.msra.gmra.mxu0 %vm497_vm0, %v1417_v15  ;;  %1390 = vmatmul.msk.bf16.vlgmr.msra.gmra.mxu3 %vm660_vm2, %v1409_v23  ;;  %p1634_p0 = pnand %p1633_p13, %p1629_p7 }
  0x33   : > { %1342 = vmatmul.msk.bf16.vlgmr.msra.gmra.mxu1 %vm497_vm0, %v1417_v15 }
  0x34   : > { %838 = vperm.xlu0 %1497, %v796_v30  }
  0x35   : > { %843 = vperm.xlu1 %1498, %v797_v32  }
  0x38   : > { %848 = vperm.xlu2 %1499, %v798_v42  }
  0x3c   : > { %853 = vperm.xlu0 %1497, %v799_v36  }
  0x3d   : > { %858 = vperm.xlu1 %1498, %v800_v40  }
  0x40   : > { %863 = vperm.xlu2 %1499, %v801_v46  }
  0x41   : > { %1383 = vmatmul.msk.bf16.gmra.mxu2 %vm660_vm2, %v1410_v27 }
  0x42   : > { %1335 = vmatmul.msk.bf16.gmra.mxu0 %vm497_vm0, %v1418_v25  ;;  %1391 = vmatmul.msk.bf16.gmra.mxu3 %vm660_vm2, %v1410_v27 }
  0x43   : > { %1343 = vmatmul.msk.bf16.gmra.mxu1 %vm497_vm0, %v1418_v25 }
  0x44   : > { %868 = vperm.xlu0 %1497, %v802_v38  }
  0x45   : > { %873 = vperm.xlu1 %1498, %v803_v44  }
  0x48   : > { %878 = vperm.xlu2 %1499, %v804_v48  }
  0x4c   : > { %883 = vperm.xlu0 %1497, %v805_v41  }
  0x51   : > { %1384 = vmatmul.msk.bf16.gmra.mxu2 %vm660_vm2, %v1411_v29 }
  0x52   : > { %1336 = vmatmul.msk.bf16.gmra.mxu0 %vm497_vm0, %v1419_v28  ;;  %1392 = vmatmul.msk.bf16.gmra.mxu3 %vm660_vm2, %v1411_v29 }
  0x53   : > { %1344 = vmatmul.msk.bf16.gmra.mxu1 %vm497_vm0, %v1419_v28 }
  0x61   : > { %1385 = vmatmul.msk.bf16.gmra.mxu2 %vm660_vm2, %v1412_v34 }
  0x62   : > { %1337 = vmatmul.msk.bf16.gmra.mxu0 %vm497_vm0, %v1420_v33  ;;  %1393 = vmatmul.msk.bf16.gmra.mxu3 %vm660_vm2, %v1412_v34 }
  0x63   : > { %1345 = vmatmul.msk.bf16.gmra.mxu1 %vm497_vm0, %v1420_v33 }
  0x71   : > { %1386 = vmatmul.msk.bf16.gmra.mxu2 %vm660_vm2, %v1413_v39 }
  0x72   : > { %1338 = vmatmul.msk.bf16.gmra.mxu0 %vm497_vm0, %v1421_v37  ;;  %1394 = vmatmul.msk.bf16.gmra.mxu3 %vm660_vm2, %v1413_v39 }
  0x73   : > { %1346 = vmatmul.msk.bf16.gmra.mxu1 %vm497_vm0, %v1421_v37 }
  0x81   : > { %1387 = vmatmul.msk.bf16.gmra.mxu2 %vm660_vm2, %v1414_v45  ;;  %v829_v18 = vpop.permute.xlu2 %828 }
  0x82   : > { %1339 = vmatmul.msk.bf16.gmra.mxu0 %vm497_vm0, %v1422_v43  ;;  %1395 = vmatmul.msk.bf16.gmra.mxu3 %vm660_vm2, %v1414_v45 }
  0x83   : > { %1347 = vmatmul.msk.bf16.gmra.mxu1 %vm497_vm0, %v1422_v43 }
  0x8a   : > { %v834_v38 = vpop.permute.xlu2 %833 }
  0x91   : > { %1388 = vmatmul.msk.bf16.gmra.mxu2 %vm660_vm2, %v1415_v49 }
  0x92   : > { %1340 = vmatmul.msk.bf16.gmra.mxu0 %vm497_vm0, %v1423_v47  ;;  %1396 = vmatmul.msk.bf16.gmra.mxu3 %vm660_vm2, %v1415_v49 }
  0x93   : > { %1348 = vmatmul.msk.bf16.gmra.mxu1 %vm497_vm0, %v1423_v47 }
  0x96   : > { %v809_v14 = vpop.permute.xlu0 %808 }
  0x97   : > { %v819_v29 = vpop.permute.xlu1 %818 }
  0x9e   : > { %v814_v32 = vpop.permute.xlu0 %813 }
  0xa1   : > { %1389 = vmatmul.msk.bf16.gmra.mxu2 %vm660_vm2, %v1416_v51 }
  0xa2   : > { %1341 = vmatmul.msk.bf16.gmra.mxu0 %vm497_vm0, %v1424_v50  ;;  %1397 = vmatmul.msk.bf16.gmra.mxu3 %vm660_vm2, %v1416_v51 }
  0xa3   : > { %1349 = vmatmul.msk.bf16.gmra.mxu1 %vm497_vm0, %v1424_v50 }
  0xaf   : > { %v531_v52 = vpop.f32.mrf.mxu0 }
  0xb0   : > { %v580_v53 = vpop.f32.mrf.mxu1 }
  0xb4   : > { %v701_v56 = vpop.f32.mrf.mxu2 }
  0xb5   : > { %v750_v57 = vpop.f32.mrf.mxu3  ;;  %v702_v19 = vadd.f32 %v701_v56, %v531_v52 }
  0xb6   : > { %v751_v20 = vadd.f32 %v750_v57, %v580_v53  ;;  %v824_v53 = vpop.permute.xlu1 %823  ;;  %v839_v57 = vpop.permute.xlu0 %838 }
  0xb7   : > { %v533_v54 = vpop.f32.mrf.mxu0  ;;  %v886_v25 = vadd.f32 %v809_v14, %v702_v19 }
  0xb8   : > { %v582_v55 = vpop.f32.mrf.mxu1  ;;  %v887_v26 = vadd.f32 %v809_v14, %v751_v20 }
  0xb9   : > { %v918_v34 = vmul.f32 0.5, %v886_v25 }
  0xba   : > { %v919_v36 = vmul.f32 0.5, %v887_v26 }
  0xbc   : > { %v703_v60 = vpop.f32.mrf.mxu2 }
  0xbd   : > { %v752_v61 = vpop.f32.mrf.mxu3  ;;  %v704_v28 = vadd.f32 %v703_v60, %v533_v54  ;;  %v849_v60 = vpop.permute.xlu2 %848 }
  0xbe   : > { %v753_v35 = vadd.f32 %v752_v61, %v582_v55 }
  0xbf   : > { %v536_v58 = vpop.f32.mrf.mxu0  ;;  %v888_v39 = vadd.f32 %v814_v32, %v704_v28  ;;  %v1022_v28 = vld [vmem:[%s2012_s20] sm:$0xff] }
  0xc0   : > { %v585_v59 = vpop.f32.mrf.mxu1  ;;  %v889_v44 = vadd.f32 %v814_v32, %v753_v35 }
  0xc1   : > { %v920_v47 = vmul.f32 0.5, %v888_v39 }
  0xc2   : > { %v921_v52 = vmul.f32 0.5, %v889_v44 }
  0xc4   : > { %v706_v0 = vpop.f32.mrf.mxu2 }
  0xc5   : > { %v755_v1 = vpop.f32.mrf.mxu3  ;;  %v707_v50 = vadd.f32 %v706_v0, %v536_v58 }
  0xc6   : > { %v756_v51 = vadd.f32 %v755_v1, %v585_v59 }
  0xc7   : > { %v1989_v62 = vpop.f32.mrf.mxu0 }
  0xc8   : > { %v1991_v63 = vpop.f32.mrf.mxu1 }
  0xcc   : > { %v1993_v4 = vpop.f32.mrf.mxu2 }
  0xcd   : > { %v1995_v5 = vpop.f32.mrf.mxu3  ;;  %v709_v0 = vadd.f32 %v1993_v4, %v1989_v62 }
  0xcf   : > { %v541_v2 = vpop.f32.mrf.mxu0  ;;  %v892_v25 = vadd.f32 %v824_v53, %v709_v0 }
  0xd0   : > { %v590_v3 = vpop.f32.mrf.mxu1 }
  0xd4   : > { %v711_v8 = vpop.f32.mrf.mxu2 }
  0xd5   : > { %v760_v9 = vpop.f32.mrf.mxu3  ;;  %v712_v17 = vadd.f32 %v711_v8, %v541_v2 }
  0xd6   : > { %v761_v21 = vadd.f32 %v760_v9, %v590_v3  ;;  %v890_v9 = vadd.f32 %v819_v29, %v707_v50 }
  0xd7   : > { %v543_v6 = vpop.f32.mrf.mxu0  ;;  %v894_v24 = vadd.f32 %v829_v18, %v712_v17 }
  0xd8   : > { %v592_v7 = vpop.f32.mrf.mxu1  ;;  %v895_v30 = vadd.f32 %v829_v18, %v761_v21  ;;  %v922_v20 = vmul.f32 0.5, %v890_v9 }
  0xd9   : > { %v950_v33 = vmul.f32 0.5, %v894_v24  ;;  %v758_v24 = vadd.f32 %v1995_v5, %v1991_v63 }
  0xda   : > { %v951_v40 = vmul.f32 0.5, %v895_v30 }
  0xdb   : > { %1500 = vtanh.f32 %v950_v33 }
  0xdc   : > { %v713_v12 = vpop.f32.mrf.mxu2  ;;  %1502 = vtanh.f32 %v918_v34 }
  0xdd   : > { %v762_v13 = vpop.f32.mrf.mxu3  ;;  %v714_v37 = vadd.f32 %v713_v12, %v543_v6  ;;  %1504 = vtanh.f32 %v919_v36  ;;  %v891_v12 = vadd.f32 %v819_v29, %v756_v51 }
  0xde   : > { %v763_v41 = vadd.f32 %v762_v13, %v592_v7  ;;  %1506 = vtanh.f32 %v951_v40 }
  0xdf   : > { %v546_v10 = vpop.f32.mrf.mxu0  ;;  %v896_v45 = vadd.f32 %v834_v38, %v714_v37  ;;  %1508 = vtanh.f32 %v920_v47  ;;  %v923_v21 = vmul.f32 0.5, %v891_v12 }
  0xe0   : > { %v595_v11 = vpop.f32.mrf.mxu1  ;;  %v897_v48 = vadd.f32 %v834_v38, %v763_v41  ;;  %1510 = vtanh.f32 %v921_v52  ;;  %v924_v41 = vmul.f32 0.5, %v892_v25 }
  0xe1   : > { %v1501_v54 = vpop.eup %1500  ;;  %v952_v55 = vmul.f32 0.5, %v896_v45  ;;  %v854_v45 = vpop.permute.xlu0 %853 }
  0xe2   : > { %v1503_v61 = vpop.eup %1502  ;;  %v953_v2 = vmul.f32 0.5, %v897_v48  ;;  %v966_v1 = vadd.f32 1.0, %v1501_v54 }
  0xe3   : > { %v1505_v8 = vpop.eup %1504  ;;  %1512 = vtanh.f32 %v952_v55 }
  0xe4   : > { %v716_v22 = vpop.f32.mrf.mxu2  ;;  %v1507_v59 = vpop.eup %1506  ;;  %v935_v18 = vadd.f32 1.0, %v1505_v8  ;;  %1514 = vtanh.f32 %v953_v2  ;;  %v974_v26 = vmul.f32 0.5, %v966_v1  ;;  %v1024_v1 = vld [vmem:[%s2012_s20 + $0x10] sm:$0xff] }
  0xe5   : > { %v765_v23 = vpop.f32.mrf.mxu3  ;;  %v717_v56 = vadd.f32 %v716_v22, %v546_v10  ;;  %v967_v22 = vadd.f32 1.0, %v1507_v59 }
  0xe6   : > { %v766_v3 = vadd.f32 %v765_v23, %v595_v11  ;;  %v934_v11 = vadd.f32 1.0, %v1503_v61  ;;  %v1509_v23 = vpop.eup %1508  ;;  %v943_v33 = vmul.f32 0.5, %v935_v18  ;;  %v1030_v44 = vmul.f32 %v1022_v28, %v974_v26 }
  0xe7   : > { %v1997_v15 = vpop.f32.mrf.mxu0  ;;  %v898_v10 = vadd.f32 %v839_v57, %v717_v56  ;;  %v975_v5 = vmul.f32 0.5, %v967_v22 }
  0xe8   : > { %v1999_v16 = vpop.f32.mrf.mxu1  ;;  %v899_v19 = vadd.f32 %v839_v57, %v766_v3  ;;  %v942_v32 = vmul.f32 0.5, %v934_v11 }
  0xe9   : > { %v954_v29 = vmul.f32 0.5, %v898_v10 }
  0xea   : > { %v955_v34 = vmul.f32 0.5, %v899_v19  ;;  %v1025_v19 = vld [vmem:[%s2012_s20 + $0x18] sm:$0xff] }
  0xec   : > { %v718_v42 = vpop.f32.mrf.mxu2 }
  0xed   : > { %v2001_v43 = vpop.f32.mrf.mxu3  ;;  %v719_v30 = vadd.f32 %v718_v42, %v1997_v15  ;;  %v893_v15 = vadd.f32 %v824_v53, %v758_v24  ;;  %v1023_v42 = vld [vmem:[%s2012_s20 + $0x8] sm:$0xff]  ;;  %v936_v53 = vadd.f32 1.0, %v1509_v23 }
  0xee   : > { %v768_v35 = vadd.f32 %v2001_v43, %v1999_v16 }
  0xef   : > { %v551_v27 = vpop.f32.mrf.mxu0  ;;  %v925_v56 = vmul.f32 0.5, %v893_v15  ;;  %v944_v18 = vmul.f32 0.5, %v936_v53 }
  0xf0   : > { %v600_v31 = vpop.f32.mrf.mxu1 }
  0xf4   : > { %v721_v6 = vpop.f32.mrf.mxu2 }
  0xf5   : > { %v770_v7 = vpop.f32.mrf.mxu3  ;;  %v722_v13 = vadd.f32 %v721_v6, %v551_v27  ;;  %v844_v27 = vpop.permute.xlu1 %843 }
  0xf6   : > { %v771_v58 = vadd.f32 %v770_v7, %v600_v31  ;;  %v1511_v31 = vpop.eup %1510  ;;  %v900_v48 = vadd.f32 %v844_v27, %v719_v30  ;;  %v901_v52 = vadd.f32 %v844_v27, %v768_v35 }
  0xf7   : > { %v2003_v46 = vpop.f32.mrf.mxu0  ;;  %v902_v14 = vadd.f32 %v849_v60, %v722_v13  ;;  %v1513_v63 = vpop.eup %1512  ;;  %v937_v2 = vadd.f32 1.0, %v1511_v31 }
  0xf8   : > { %v602_v49 = vpop.f32.mrf.mxu1  ;;  %v903_v17 = vadd.f32 %v849_v60, %v771_v58  ;;  %v1515_v40 = vpop.eup %1514  ;;  %v968_v51 = vadd.f32 1.0, %v1513_v63  ;;  %v956_v3 = vmul.f32 0.5, %v900_v48  ;;  %v957_v13 = vmul.f32 0.5, %v901_v52 }
  0xf9   : > { %1516 = vtanh.f32 %v902_v14 }
  0xfa   : > { %1518 = vtanh.f32 %v903_v17  ;;  %v976_v12 = vmul.f32 0.5, %v968_v51 }
  0xfb   : > { %1520 = vtanh.f32 %v922_v20 }
  0xfc   : > { %v723_v36 = vpop.f32.mrf.mxu2  ;;  %1522 = vtanh.f32 %v923_v21  ;;  %v945_v21 = vmul.f32 0.5, %v937_v2  ;;  %v1032_v25 = vmul.f32 %v1024_v1, %v976_v12  ;;  %v869_v1 = vpop.permute.xlu0 %868 }
  0xfd   : > { %v772_v37 = vpop.f32.mrf.mxu3  ;;  %v724_v38 = vadd.f32 %v723_v36, %v2003_v46  ;;  %1524 = vtanh.f32 %v954_v29  ;;  %v1031_v46 = vmul.f32 %v1023_v42, %v975_v5  ;;  %v859_v60 = vpop.permute.xlu1 %858  ;;  %v1026_v5 = vld [vmem:[%s2012_s20 + $0x20] sm:$0xff] }
  0xfe   : > { %v773_v39 = vadd.f32 %v772_v37, %v602_v49  ;;  %1526 = vtanh.f32 %v955_v34  ;;  %v969_v49 = vadd.f32 1.0, %v1515_v40 }
  0xff   : > { %v2014_v62 = vpop.f32.mrf.mxu0  ;;  %v1517_v47 = vpop.eup %1516  ;;  %v904_v16 = vadd.f32 %v854_v45, %v724_v38 }
 0x100   : > { %v2016_v4 = vpop.f32.mrf.mxu1  ;;  %v905_v43 = vadd.f32 %v854_v45, %v773_v39  ;;  %v1519_v50 = vpop.eup %1518  ;;  %v1038_v54 = vmul.f32 %v1517_v47, %v942_v32  ;;  %v977_v10 = vmul.f32 0.5, %v969_v49  ;;  %v1027_v45 = vld [vmem:[%s2012_s20 + $0x28] sm:$0xff] }
 0x101   : > { %v1039_v55 = vmul.f32 %v1519_v50, %v943_v33  ;;  %1528 = vtanh.f32 %v904_v16  ;;  %v1521_v61 = vpop.eup %1520  ;;  %v864_v47 = vpop.permute.xlu2 %863 }
 0x102   : > { %v2027_v57 = vadd.f32 %v1038_v54, %v1030_v44  ;;  %1530 = vtanh.f32 %v905_v43  ;;  %v1523_v9 = vpop.eup %1522  ;;  %v1033_v28 = vmul.f32 %v1025_v19, %v977_v10 }
 0x103   : > { %v2029_v6 = vadd.f32 %v1039_v55, %v1031_v46  ;;  %v1525_v0 = vpop.eup %1524  ;;  %1532 = vtanh.f32 %v924_v41  ;;  %v939_v32 = vadd.f32 1.0, %v1523_v9  ;;  %v1028_v9 = vld [vmem:[%s2012_s20 + $0x30] sm:$0xff] }
 0x104   : > { %1078 = vst [vmem:[%s2033_s17] sm:$0xff] %v2027_v57  ;;  %v726_v58 = vpop.f32.mrf.mxu2  ;;  %v1527_v11 = vpop.eup %1526  ;;  %1534 = vtanh.f32 %v925_v56  ;;  %v970_v26 = vadd.f32 1.0, %v1525_v0  ;;  %v1029_v0 = vld [vmem:[%s2012_s20 + $0x38] sm:$0xff] }
 0x105   : > { %v775_v59 = vpop.f32.mrf.mxu3  ;;  %1079 = vst [vmem:[%s2033_s17 + $0x8] sm:$0xff] %v2029_v6  ;;  %v727_v14 = vadd.f32 %v726_v58, %v2014_v62  ;;  %1536 = vtanh.f32 %v956_v3  ;;  %v971_v62 = vadd.f32 1.0, %v1527_v11  ;;  %v947_v16 = vmul.f32 0.5, %v939_v32  ;;  %v874_v32 = vpop.permute.xlu1 %873 }
 0x106   : > { %v776_v17 = vadd.f32 %v775_v59, %v2016_v4  ;;  %1538 = vtanh.f32 %v957_v13  ;;  %v938_v4 = vadd.f32 1.0, %v1521_v61  ;;  %v978_v35 = vmul.f32 0.5, %v970_v26 }
 0x107   : > { %v558_v7 = vpop.f32.mrf.mxu0  ;;  %v1529_v20 = vpop.eup %1528  ;;  %v906_v22 = vadd.f32 %v859_v60, %v727_v14  ;;  %v979_v38 = vmul.f32 0.5, %v971_v62 }
 0x108   : > { %v607_v8 = vpop.f32.mrf.mxu1  ;;  %v907_v23 = vadd.f32 %v859_v60, %v776_v17  ;;  %v1531_v24 = vpop.eup %1530  ;;  %v1040_v27 = vmul.f32 %v1529_v20, %v944_v18  ;;  %v946_v44 = vmul.f32 0.5, %v938_v4  ;;  %v1034_v52 = vmul.f32 %v1026_v5, %v978_v35 }
 0x109   : > { %v1041_v29 = vmul.f32 %v1531_v24, %v945_v21  ;;  %1540 = vtanh.f32 %v906_v22  ;;  %v1533_v31 = vpop.eup %1532  ;;  %v1035_v49 = vmul.f32 %v1027_v45, %v979_v38 }
 0x10a   : > { %v2043_v30 = vadd.f32 %v1040_v27, %v1032_v25  ;;  %1542 = vtanh.f32 %v907_v23  ;;  %v1535_v34 = vpop.eup %1534  ;;  %v940_v56 = vadd.f32 1.0, %v1533_v31 }
 0x10b   : > { %v2045_v33 = vadd.f32 %v1041_v29, %v1033_v28  ;;  %v1537_v63 = vpop.eup %1536  ;;  %v941_v61 = vadd.f32 1.0, %v1535_v34 }
 0x10c   : > { %1080 = vst [vmem:[%s2033_s17 + $0x10] sm:$0xff] %v2043_v30  ;;  %v728_v36 = vpop.f32.mrf.mxu2  ;;  %v1539_v42 = vpop.eup %1538  ;;  %v972_v54 = vadd.f32 1.0, %v1537_v63  ;;  %v948_v59 = vmul.f32 0.5, %v940_v56 }
 0x10d   : > { %v777_v37 = vpop.f32.mrf.mxu3  ;;  %1081 = vst [vmem:[%s2033_s17 + $0x18] sm:$0xff] %v2045_v33  ;;  %v729_v15 = vadd.f32 %v728_v36, %v558_v7  ;;  %v973_v55 = vadd.f32 1.0, %v1539_v42  ;;  %v949_v14 = vmul.f32 0.5, %v941_v61 }
 0x10e   : > { %v778_v41 = vadd.f32 %v777_v37, %v607_v8  ;;  %v980_v3 = vmul.f32 0.5, %v972_v54 }
 0x10f   : > { %v561_v39 = vpop.f32.mrf.mxu0  ;;  %v1541_v48 = vpop.eup %1540  ;;  %v908_v43 = vadd.f32 %v864_v47, %v729_v15  ;;  %v981_v12 = vmul.f32 0.5, %v973_v55 }
 0x110   : > { %v610_v40 = vpop.f32.mrf.mxu1  ;;  %v909_v50 = vadd.f32 %v864_v47, %v778_v41  ;;  %v1543_v51 = vpop.eup %1542  ;;  %v1042_v46 = vmul.f32 %v1541_v48, %v946_v44  ;;  %v1036_v21 = vmul.f32 %v1028_v9, %v980_v3 }
 0x111   : > { %v1043_v53 = vmul.f32 %v1543_v51, %v947_v16  ;;  %1544 = vtanh.f32 %v908_v43  ;;  %v1037_v23 = vmul.f32 %v1029_v0, %v981_v12 }
 0x112   : > { %v2053_v60 = vadd.f32 %v1042_v46, %v1034_v52  ;;  %1546 = vtanh.f32 %v909_v50 }
 0x113   : > { %v2056_v2 = vadd.f32 %v1043_v53, %v1035_v49 }
 0x114   : > { %1082 = vst [vmem:[%s2033_s17 + $0x20] sm:$0xff] %v2053_v60  ;;  %v731_v7 = vpop.f32.mrf.mxu2 }
 0x115   : > { %v780_v8 = vpop.f32.mrf.mxu3  ;;  %1083 = vst [vmem:[%s2033_s17 + $0x28] sm:$0xff] %v2056_v2  ;;  %v732_v13 = vadd.f32 %v731_v7, %v561_v39 }
 0x116   : > { %v781_v58 = vadd.f32 %v780_v8, %v610_v40 }
 0x117   : > { %v1545_v10 = vpop.eup %1544  ;;  %v563_v17 = vpop.f32.mrf.mxu0  ;;  %v910_v18 = vadd.f32 %v869_v1, %v732_v13 }
 0x118   : > { %v612_v11 = vpop.f32.mrf.mxu1  ;;  %v911_v19 = vadd.f32 %v869_v1, %v781_v58  ;;  %v1547_v20 = vpop.eup %1546  ;;  %v1044_v22 = vmul.f32 %v1545_v10, %v948_v59 }
 0x119   : > { %v1045_v24 = vmul.f32 %v1547_v20, %v949_v14  ;;  %v990_v25 = vmul.f32 0.5, %v910_v18 }
 0x11a   : > { %v2070_v26 = vadd.f32 %v1044_v22, %v1036_v21  ;;  %v991_v27 = vmul.f32 0.5, %v911_v19 }
 0x11b   : > { %v2072_v28 = vadd.f32 %v1045_v24, %v1037_v23  ;;  %1548 = vtanh.f32 %v990_v25 }
 0x11c   : > { %1084 = vst [vmem:[%s2033_s17 + $0x30] sm:$0xff] %v2070_v26  ;;  %v733_v62 = vpop.f32.mrf.mxu2  ;;  %1550 = vtanh.f32 %v991_v27 }
 0x11d   : > { %v782_v29 = vpop.f32.mrf.mxu3  ;;  %1085 = vst [vmem:[%s2033_s17 + $0x38] sm:$0xff] %v2072_v28  ;;  %v734_v4 = vadd.f32 %v733_v62, %v563_v17 }
 0x11e   : > { %v783_v31 = vadd.f32 %v782_v29, %v612_v11 }
 0x11f   : > { %1637 = shalt.err (!%p1634_p0)
}
 0x120   : > { %s1727_s17 = smov 256   ;;  %s1728_s11 = smov 16   ;;  %1552 = vtanh.f32 %v2027_v57  ;;  %v912_v34 = vadd.f32 %v874_v32, %v734_v4  ;;  %v913_v35 = vadd.f32 %v874_v32, %v783_v31  ;;  %v566_v37 = vpop.f32.mrf.mxu0  ;;  %v615_v63 = vpop.f32.mrf.mxu1 }
 0x121   : > { %1430 = dma.vmem_to_hbm [thread:$0]  (%p1820_p9), %s2074_s30, 1024, %s1128_s12, %s1092_s8, %s1727_s17, %s1727_s17, %s1728_s11   ;;  %v1549_v36 = vpop.eup %1548  ;;  %1554 = vtanh.f32 %v2029_v6  ;;  %v879_v48 = vpop.permute.xlu2 %878 }
 0x122   : > { %v992_v5 = vmul.f32 0.5, %v912_v34  ;;  %v993_v38 = vmul.f32 0.5, %v913_v35  ;;  %v1006_v39 = vadd.f32 1.0, %v1549_v36  ;;  %v1551_v40 = vpop.eup %1550  ;;  %s2172_s21 = sshll.u32 %s1843_s10, 6  ;;  %v884_v59 = vpop.permute.xlu0 %883  ;;  %s2173_s12 = sshll.u32 %s1716_s27, 6 }
 0x123   : > { %v1007_v45 = vadd.f32 1.0, %v1551_v40  ;;  %s2101_s30 = scalar_lea.vmem [#allocation5], %s2172_s21  ;;  %s1105_s18 = scalar_lea.hbm %s2164_s6, %s2173_s12 }
 0x124   : > { %1556 = vtanh.f32 %v992_v5  ;;  %v1014_v15 = vmul.f32 0.5, %v1006_v39  ;;  %v736_v41 = vpop.f32.mrf.mxu2  ;;  %s1106_s20 = sshll.u32 %s2101_s30, 4  ;;  %s1108_s22 = sshll.u32 %s1105_s18, 4  ;;  %s1107_s20 = int_to_ptr.vmem [resolvable:$true] %s1106_s20  ;;  %s1109_s22 = int_to_ptr.hbm [resolvable:$true] %s1108_s22 }
 0x125   : > { %1558 = vtanh.f32 %v993_v38  ;;  %v785_v42 = vpop.f32.mrf.mxu3  ;;  %v737_v57 = vadd.f32 %v736_v41, %v566_v37  ;;  %v1015_v43 = vmul.f32 0.5, %v1007_v45  ;;  %s1087_s27 = scalar_lea.sflag [#allocation4], %s1843_s10  ;;  %s1652_s23 = sshra.s32 %s1109_s22, 4  ;;  %s1653_s23 = int_to_ptr.hbm [resolvable:$true] %s1652_s23 }
 0x126   : > { %v1553_v44 = vpop.eup %1552  ;;  %v786_v47 = vadd.f32 %v785_v42, %v615_v63  ;;  %1560 = vtanh.f32 %v2043_v30  ;;  %s1654_s13 = scalar_lea.hbm %s1653_s23, 64  ;;  %s1658_s8 = scalar_lea.hbm %s2164_s6, 128 }
 0x127   : > { %v1062_v16 = vmul.f32 %v1553_v44, %v1014_v15  ;;  %v914_v50 = vadd.f32 %v879_v48, %v737_v57  ;;  %v1555_v6 = vpop.eup %1554  ;;  %1562 = vtanh.f32 %v2045_v33  ;;  %p1655_p1 = scmp.ne.s32.totalorder %s1653_s23, %s1654_s13  ;;  %p1659_p4 = scmp.lt.s32.totalorder %s1653_s23, %s2164_s6 }
 0x128   : > { %v915_v51 = vadd.f32 %v879_v48, %v786_v47  ;;  %v1063_v54 = vmul.f32 %v1555_v6, %v1015_v43  ;;  %v568_v56 = vpop.f32.mrf.mxu0  ;;  %v617_v61 = vpop.f32.mrf.mxu1  ;;  %p1660_p5 = scmp.lt.s32.totalorder %s1658_s8, %s1654_s13 }
 0x129   : > { %1070 = vst [vmem:[%s2101_s30] sm:$0xff] %v1062_v16  ;;  %v994_v46 = vmul.f32 0.5, %v914_v50  ;;  %p1656_p2 = pnand %p1655_p1, %p1820_p9 }
 0x12a   : > { %v1557_v52 = vpop.eup %1556  ;;  %v995_v49 = vmul.f32 0.5, %v915_v51  ;;  %1071 = vst [vmem:[%s2101_s30 + $0x8] sm:$0xff] %v1063_v54  ;;  %p1661_p6 = por %p1660_p5, %p1659_p4 }
 0x12b   : > { %v1559_v55 = vpop.eup %1558  ;;  %v1008_v53 = vadd.f32 1.0, %v1557_v52  ;;  %1564 = vtanh.f32 %v994_v46  ;;  %p1657_p3 = pneg %p1656_p2 }
 0x12c   : > { %v1009_v30 = vadd.f32 1.0, %v1559_v55  ;;  %1566 = vtanh.f32 %v995_v49  ;;  %v738_v33 = vpop.f32.mrf.mxu2  ;;  %v1561_v8 = vpop.eup %1560 }
 0x12d   : > { %v1016_v3 = vmul.f32 0.5, %v1008_v53  ;;  %v787_v7 = vpop.f32.mrf.mxu3  ;;  %v739_v12 = vadd.f32 %v738_v33, %v568_v56  ;;  %v1563_v58 = vpop.eup %1562  ;;  %1568 = vtanh.f32 %v2053_v60  ;;  %p1662_p7 = pnand %p1661_p6, %p1657_p3 }
 0x12e   : > { %v1017_v9 = vmul.f32 0.5, %v1009_v30  ;;  %v788_v13 = vadd.f32 %v787_v7, %v617_v61  ;;  %1570 = vtanh.f32 %v2056_v2 }
 0x12f   : > { %v1064_v0 = vmul.f32 %v1561_v8, %v1016_v3  ;;  %v916_v10 = vadd.f32 %v884_v59, %v739_v12 }
 0x130   : > { %v1065_v1 = vmul.f32 %v1563_v58, %v1017_v9  ;;  %v917_v14 = vadd.f32 %v884_v59, %v788_v13 }
 0x131   : > { %1072 = vst [vmem:[%s2101_s30 + $0x10] sm:$0xff] %v1064_v0  ;;  %v1565_v17 = vpop.eup %1564  ;;  %v996_v11 = vmul.f32 0.5, %v916_v10 }
 0x132   : > { %1073 = vst [vmem:[%s2101_s30 + $0x18] sm:$0xff] %v1065_v1  ;;  %v997_v18 = vmul.f32 0.5, %v917_v14  ;;  %v1567_v19 = vpop.eup %1566  ;;  %v1010_v20 = vadd.f32 1.0, %v1565_v17 }
 0x133   : > { %v1011_v21 = vadd.f32 1.0, %v1567_v19  ;;  %1572 = vtanh.f32 %v996_v11  ;;  %v1569_v60 = vpop.eup %1568 }
 0x134   : > { %v1018_v22 = vmul.f32 0.5, %v1010_v20  ;;  %1574 = vtanh.f32 %v997_v18  ;;  %v1571_v24 = vpop.eup %1570 }
 0x135   : > { %v1019_v23 = vmul.f32 0.5, %v1011_v21  ;;  %1576 = vtanh.f32 %v2070_v26 }
 0x136   : > { %v1066_v25 = vmul.f32 %v1569_v60, %v1018_v22  ;;  %1578 = vtanh.f32 %v2072_v28 }
 0x137   : > { %v1067_v2 = vmul.f32 %v1571_v24, %v1019_v23 }
 0x138   : > { %1074 = vst [vmem:[%s2101_s30 + $0x20] sm:$0xff] %v1066_v25 }
 0x139   : > { %v1573_v27 = vpop.eup %1572  ;;  %1075 = vst [vmem:[%s2101_s30 + $0x28] sm:$0xff] %v1067_v2 }
 0x13a   : > { %v1575_v62 = vpop.eup %1574  ;;  %v1012_v29 = vadd.f32 1.0, %v1573_v27 }
 0x13b   : > { %v1013_v4 = vadd.f32 1.0, %v1575_v62  ;;  %v1577_v26 = vpop.eup %1576 }
 0x13c   : > { %v1020_v31 = vmul.f32 0.5, %v1012_v29  ;;  %v1579_v32 = vpop.eup %1578 }
 0x13d   : > { %v1021_v28 = vmul.f32 0.5, %v1013_v4 }
 0x13e   : > { %v1068_v34 = vmul.f32 %v1577_v26, %v1020_v31 }
 0x13f   : > { %v1069_v35 = vmul.f32 %v1579_v32, %v1021_v28 }
 0x140   : > { %1076 = vst [vmem:[%s2101_s30 + $0x30] sm:$0xff] %v1068_v34 }
 0x141   : > { %1077 = vst [vmem:[%s2101_s30 + $0x38] sm:$0xff] %v1069_v35 }
 0x142   : > { %1665 = shalt.err (!%p1662_p7)
}
 0x143   : > { %1429 = dma.vmem_to_hbm [thread:$0]  (%p1820_p9), %s1107_s20, 1024, %s1109_s22, %s1087_s27, %s1727_s17, %s1727_s17, %s1728_s11  }
 0x144 PF: > { %s1142_s10 = sand.u32 1, %s1704_s24   ;;  %p1438_p8 = pnand %p1290_p12, %p1827_p11 }
 0x145   : > { %s1143_s30 = scalar_lea.sflag [#allocation4], %s1142_s10 }
 0x146   : > { %p1439_p10 = pneg %p1438_p8 }
 0x148   : > { %1695 = dma.done.wait (%p1439_p10), %s1143_s30, 1024  }
 0x149   : > { %1697 = vsyncadd (%p1439_p10), %s1143_s30, 4294966272  ;;  %s1153_s23 = scalar_lea.sflag [#allocation7], %s1142_s10 }
 0x14a   : > { %1699 = dma.done.wait (%p1439_p10), %s1153_s23, 1024  }
 0x14b   : > { %1701 = vsyncadd (%p1439_p10), %s1153_s23, 4294966272  ;;  %s27_s29 = sadd.s32 1, %s1724_s29   ;;  %s2174_s24 = smov %s1708_s25 }
 0x14c   : > { %p24_p13 = scmp.ge.s32.totalorder %s27_s29, 4   ;;  %s2175_s25 = smov %s1712_s26 }
 0x14d   : > { %s2176_s26 = smov %s1825_s15  ;;  %s2177_s27 = smov %s1720_s28 }
 0x14e   : > { %s2178_s28 = smov %s2180_s9  ;;  %26 = sbr.rel (!%p24_p13) target bundleno = 8 (0x8), region = 112 }
 0x153   :  { %1159 = vsyncpa [#allocation3], 1 }
 0x154   :  { %1161 = vsyncpa [#allocation3 + $0x1], 1 }
 0x155   :  { %1162 = vsyncpa [#allocation4], 1 }
 0x156   :  { %1164 = vsyncpa [#allocation4 + $0x1], 1 }
 0x157   :  { %1165 = vsyncpa [#allocation7], 1 }
 0x158   :  { %1167 = vsyncpa [#allocation7 + $0x1], 1 }

</bundles_post_ra>
